<compile_context>
chip_gen: v7x
topology: tpu7x:2x2x1
jax: 0.10.0
libtpu: 0.0.40
codegen_flags: <defaults>
</compile_context>

<pallas_src>
import jax
import jax.numpy as jnp
from jax.experimental import pallas as pl
from jax.experimental.pallas import tpu as pltpu


HIDDEN = 128  # fixed by the module: nn.Linear(dims, 128)


def _round_up(n, m):
    return ((n + m - 1) // m) * m


def _cdiv(a, b):
    return (a + b - 1) // b


def _mlp_tile(x_ref, w1_ref, b1_ref, w2_ref, b2_ref):
    """h = sigmoid(x @ W1 + b1); y = h @ W2 + b2, with f32 accumulation."""
    x = x_ref[...]  # native dtype straight into the MXU (bf16 fast path if bf16)
    z = jnp.dot(x, w1_ref[...], preferred_element_type=jnp.float32)
    z = z + b1_ref[...].astype(jnp.float32)          # (1, 128) broadcasts over rows
    h = 1.0 / (1.0 + jnp.exp(-z))                    # sigmoid (exp on EUP)
    y = jnp.dot(h.astype(w2_ref.dtype), w2_ref[...],
                preferred_element_type=jnp.float32)
    y = y + b2_ref[...].astype(jnp.float32)          # (1, dims) broadcasts over rows
    return h, y


def _mlp_kernel_hy(x_ref, w1_ref, b1_ref, w2_ref, b2_ref, h_ref, y_ref):
    h, y = _mlp_tile(x_ref, w1_ref, b1_ref, w2_ref, b2_ref)
    h_ref[...] = h.astype(h_ref.dtype)
    y_ref[...] = y.astype(y_ref.dtype)


def _mlp_kernel_y(x_ref, w1_ref, b1_ref, w2_ref, b2_ref, y_ref):
    _, y = _mlp_tile(x_ref, w1_ref, b1_ref, w2_ref, b2_ref)
    y_ref[...] = y.astype(y_ref.dtype)


def _vmem_budget_and_limit():
    """Return (budget for tile sizing, vmem_limit_bytes), generation-aware."""
    try:
        cap = pltpu.get_tpu_info().vmem_capacity_bytes
    except Exception:
        cap = 64 * 1024 * 1024  # conservative: assume v7x-sized VMEM
    if cap >= 100 * 1024 * 1024:                    # v5e / v6e: 128 MiB physical
        return 88 * 1024 * 1024, 100 * 1024 * 1024
    return 36 * 1024 * 1024, 48 * 1024 * 1024       # v7x: 64 MiB physical


def two_layer_mlp_forward(x, w1, b1, w2, b2, *, block_batch=1024, return_hidden=True):
    """
    Args:
      x:  (B, dims)   input features
      w1: (dims, 128) fc1 weight in (in, out) layout (PyTorch weight transposed)
      b1: (128,)      fc1 bias
      w2: (128, dims) fc2 weight in (in, out) layout
      b2: (dims,)     fc2 bias
      block_batch:    max batch-tile rows per grid step
      return_hidden:  if False, skip the h writeback (pure HBM-write savings)
    Returns:
      (h, y) matching the PyTorch forward, or just y when return_hidden=False.
    """
    B, dims = x.shape
    assert w1.shape == (dims, HIDDEN)
    assert b1.shape == (HIDDEN,)
    assert w2.shape == (HIDDEN, dims)
    assert b2.shape == (dims,)

    out_dtype = x.dtype
    itemsize = jnp.dtype(out_dtype).itemsize
    w_itemsize = jnp.dtype(w1.dtype).itemsize

    # Sublane packing of the batch axis: 8 rows/vreg f32, 16 bf16, 32 int8/fp8.
    sub = max(8, 32 // itemsize)

    budget, vmem_limit = _vmem_budget_and_limit()

    def _vmem_estimate(tb):
        io = 2 * tb * (2 * dims + HIDDEN) * itemsize   # double-buffered x, y, h tiles
        wb = 2 * dims * HIDDEN * w_itemsize            # W1 + W2, single-buffered (resident)
        bb = (HIDDEN + dims) * w_itemsize              # biases
        f32_tmp = tb * (dims + HIDDEN) * 4             # in-kernel f32 h/y before the casts
        return io + wb + bb + f32_tmp + (2 << 20)      # + Mosaic internal-scratch margin

    # Batch-tile selection.
    if B <= sub:
        TB = B                                         # one full-batch block (legal: == array dim)
    else:
        TB = _round_up(min(block_batch, B), sub)
        # Keep >= 2 grid steps so v7x can shard batch tiles across both TCs.
        TB = min(TB, _round_up(_cdiv(B, 2), sub))
        TB = max(TB, sub)
        while TB > sub and _vmem_estimate(TB) > budget:
            TB = max(sub, _round_up(TB // 2, sub))
    # TODO(synk): for very large dims on v7x (TB forced below ~512), add a second
    # "arbitrary" grid axis tiling fc2's output columns and reuse h from VMEM scratch.

    grid = (_cdiv(B, TB),)

    b1_2d = b1.reshape(1, HIDDEN)
    b2_2d = b2.reshape(1, dims)

    bytes_accessed = int(
        B * dims * itemsize                                  # x
        + 2 * dims * HIDDEN * w_itemsize                     # W1 + W2
        + (HIDDEN + dims) * w_itemsize                       # biases
        + (B * HIDDEN * itemsize if return_hidden else 0)    # h out
        + B * dims * itemsize                                # y out
    )
    cost = pl.CostEstimate(
        flops=int(4 * B * dims * HIDDEN),     # two matmuls @ 2*M*K*N each
        transcendentals=int(B * HIDDEN),      # exp in sigmoid
        bytes_accessed=bytes_accessed,
    )

    def _build(single_buffer_weights):
        if single_buffer_weights:
            def _resident(shape):
                return pl.BlockSpec(shape, lambda i: (0, 0),
                                    pipeline_mode=pl.Buffered(1))
        else:
            def _resident(shape):
                return pl.BlockSpec(shape, lambda i: (0, 0))

        in_specs = [
            pl.BlockSpec((TB, dims), lambda i: (i, 0)),   # x tile
            _resident((dims, HIDDEN)),                    # W1 (VMEM-resident)
            _resident((1, HIDDEN)),                       # b1
            _resident((HIDDEN, dims)),                    # W2
            _resident((1, dims)),                         # b2
        ]
        if return_hidden:
            kernel = _mlp_kernel_hy
            out_shape = (jax.ShapeDtypeStruct((B, HIDDEN), out_dtype),
                         jax.ShapeDtypeStruct((B, dims), out_dtype))
            out_specs = (pl.BlockSpec((TB, HIDDEN), lambda i: (i, 0)),
                         pl.BlockSpec((TB, dims), lambda i: (i, 0)))
        else:
            kernel = _mlp_kernel_y
            out_shape = jax.ShapeDtypeStruct((B, dims), out_dtype)
            out_specs = pl.BlockSpec((TB, dims), lambda i: (i, 0))

        return pl.pallas_call(
            kernel,
            out_shape=out_shape,
            grid_spec=pltpu.PrefetchScalarGridSpec(
                num_scalar_prefetch=0,
                grid=grid,
                in_specs=in_specs,
                out_specs=out_specs,
            ),
            compiler_params=pltpu.CompilerParams(
                dimension_semantics=("parallel",),   # shard batch tiles across TCs (v7x)
                vmem_limit_bytes=vmem_limit,
            ),
            cost_estimate=cost,
        )

    args = (x, w1, b1_2d, w2, b2_2d)
    try:
        out = _build(single_buffer_weights=True)(*args)
    except Exception:
        # Fallback if this JAX build rejects pipeline_mode=pl.Buffered(1):
        # identical kernel, weights just get the default double buffer.
        out = _build(single_buffer_weights=False)(*args)

    return out if not return_hidden else (out[0], out[1])


if __name__ == "__main__":
    dims = 64
    batch = 37  # not a multiple of the batch tile -> exercises the masked last tile

    key = jax.random.PRNGKey(0)
    kx, k1, k2, k3, k4 = jax.random.split(key, 5)

    x = jax.random.normal(kx, (batch, dims), jnp.float32)

    # PyTorch nn.Linear-style init (uniform +/- 1/sqrt(fan_in)), stored in (in, out) layout.
    bound1 = 1.0 / (dims ** 0.5)
    bound2 = 1.0 / (HIDDEN ** 0.5)
    w1 = jax.random.uniform(k1, (dims, HIDDEN), jnp.float32, -bound1, bound1)
    b1 = jax.random.uniform(k2, (HIDDEN,), jnp.float32, -bound1, bound1)
    w2 = jax.random.uniform(k3, (HIDDEN, dims), jnp.float32, -bound2, bound2)
    b2 = jax.random.uniform(k4, (dims,), jnp.float32, -bound2, bound2)

    h, y = two_layer_mlp_forward(x, w1, b1, w2, b2)
    jax.block_until_ready((h, y))

    # Pure-JAX reference.
    h_ref = jax.nn.sigmoid(x @ w1 + b1)
    y_ref = h_ref @ w2 + b2
    assert h.shape == (batch, HIDDEN) and y.shape == (batch, dims)
    assert jnp.allclose(h, h_ref, atol=1e-2, rtol=1e-2)
    assert jnp.allclose(y, y_ref, atol=1e-2, rtol=1e-2)

    # Also exercise the y-only path (h writeback dropped).
    y_only = two_layer_mlp_forward(x, w1, b1, w2, b2, return_hidden=False)
    jax.block_until_ready(y_only)
    assert jnp.allclose(y_only, y_ref, atol=1e-2, rtol=1e-2)

    print("KERNEL_OK")
</pallas_src>

<mosaic_0001>
module attributes {stable_mosaic.version = 11 : i64} {
  func.func @_mlp_kernel_hy(%arg0: i32, %arg1: memref<24x64xf32, #tpu.memory_space<vmem>>, %arg2: memref<64x128xf32, #tpu.memory_space<vmem>>, %arg3: memref<1x128xf32, #tpu.memory_space<vmem>>, %arg4: memref<128x64xf32, #tpu.memory_space<vmem>>, %arg5: memref<1x64xf32, #tpu.memory_space<vmem>>, %arg6: memref<24x128xf32, #tpu.memory_space<vmem>>, %arg7: memref<24x64xf32, #tpu.memory_space<vmem>>) attributes {dimension_semantics = [#tpu.dimension_semantics<parallel>], iteration_bounds = array<i64: 2>, scalar_prefetch = 0 : i64, scratch_operands = 0 : i64, tpu.core_type = #tpu.core_type<tc>, window_params = [{transform_indices = @transform_0, window_bounds = array<i64: 24, 64>}, {pipeline_mode = #tpu.pipeline_mode<synchronous>, transform_indices = @transform_1, window_bounds = array<i64: 64, 128>}, {pipeline_mode = #tpu.pipeline_mode<synchronous>, transform_indices = @transform_2, window_bounds = array<i64: 1, 128>}, {pipeline_mode = #tpu.pipeline_mode<synchronous>, transform_indices = @transform_3, window_bounds = array<i64: 128, 64>}, {pipeline_mode = #tpu.pipeline_mode<synchronous>, transform_indices = @transform_4, window_bounds = array<i64: 1, 64>}, {transform_indices = @transform_5, window_bounds = array<i64: 24, 128>}, {transform_indices = @transform_6, window_bounds = array<i64: 24, 64>}]} {
    %c0 = arith.constant 0 : index
    %c0_0 = arith.constant 0 : index
    %0 = vector.load %arg1[%c0, %c0_0] : memref<24x64xf32, #tpu.memory_space<vmem>>, vector<24x64xf32>
    %c0_1 = arith.constant 0 : index
    %c0_2 = arith.constant 0 : index
    %1 = vector.load %arg2[%c0_1, %c0_2] : memref<64x128xf32, #tpu.memory_space<vmem>>, vector<64x128xf32>
    %cst = arith.constant dense<0.000000e+00> : vector<24x128xf32>
    %2 = tpu.matmul %0, %1, %cst {dimension_numbers = #tpu.dot_dimension_numbers<[1], [0], [0], [1], [0, 0, 1, 1], [], []>} : vector<24x64xf32>, vector<64x128xf32>, vector<24x128xf32> -> vector<24x128xf32>
    %c0_3 = arith.constant 0 : index
    %c0_4 = arith.constant 0 : index
    %3 = vector.load %arg3[%c0_3, %c0_4] : memref<1x128xf32, #tpu.memory_space<vmem>>, vector<1x128xf32>
    %4 = vector.broadcast %3 : vector<1x128xf32> to vector<24x128xf32>
    %5 = arith.addf %2, %4 : vector<24x128xf32>
    %cst_5 = arith.constant 0.000000e+00 : f32
    %6 = vector.broadcast %cst_5 : f32 to vector<24x128xf32>
    %7 = arith.subf %6, %5 : vector<24x128xf32>
    %8 = math.exp %7 : vector<24x128xf32>
    %cst_6 = arith.constant 1.000000e+00 : f32
    %9 = vector.broadcast %cst_6 : f32 to vector<24x128xf32>
    %10 = arith.addf %9, %8 : vector<24x128xf32>
    %cst_7 = arith.constant 1.000000e+00 : f32
    %11 = vector.broadcast %cst_7 : f32 to vector<24x128xf32>
    %12 = arith.divf %11, %10 : vector<24x128xf32>
    %c0_8 = arith.constant 0 : index
    %c0_9 = arith.constant 0 : index
    %13 = vector.load %arg4[%c0_8, %c0_9] : memref<128x64xf32, #tpu.memory_space<vmem>>, vector<128x64xf32>
    %cst_10 = arith.constant dense<0.000000e+00> : vector<24x64xf32>
    %14 = tpu.matmul %12, %13, %cst_10 {dimension_numbers = #tpu.dot_dimension_numbers<[1], [0], [0], [1], [0, 0, 1, 1], [], []>} : vector<24x128xf32>, vector<128x64xf32>, vector<24x64xf32> -> vector<24x64xf32>
    %c0_11 = arith.constant 0 : index
    %c0_12 = arith.constant 0 : index
    %15 = vector.load %arg5[%c0_11, %c0_12] : memref<1x64xf32, #tpu.memory_space<vmem>>, vector<1x64xf32>
    %16 = vector.broadcast %15 : vector<1x64xf32> to vector<24x64xf32>
    %17 = arith.addf %14, %16 : vector<24x64xf32>
    %c0_13 = arith.constant 0 : index
    %c0_14 = arith.constant 0 : index
    %18 = vector.load %arg6[%c0_13, %c0_14] : memref<24x128xf32, #tpu.memory_space<vmem>>, vector<24x128xf32>
    tpu.vector_store %arg6[%c0_13, %c0_14], %12 {strides = array<i32>} : memref<24x128xf32, #tpu.memory_space<vmem>>, vector<24x128xf32>,
    %c0_15 = arith.constant 0 : index
    %c0_16 = arith.constant 0 : index
    %19 = vector.load %arg7[%c0_15, %c0_16] : memref<24x64xf32, #tpu.memory_space<vmem>>, vector<24x64xf32>
    tpu.vector_store %arg7[%c0_15, %c0_16], %17 {strides = array<i32>} : memref<24x64xf32, #tpu.memory_space<vmem>>, vector<24x64xf32>,
    return
  }
  func.func @transform_0(%arg0: i32) -> (i32, i32) {
    %c0_i32 = arith.constant 0 : i32
    %c0_i32_0 = arith.constant 0 : i32
    return %arg0, %c0_i32 : i32, i32
  }
  func.func @transform_1(%arg0: i32) -> (i32, i32) {
    %c0_i32 = arith.constant 0 : i32
    %c0_i32_0 = arith.constant 0 : i32
    %c0_i32_1 = arith.constant 0 : i32
    return %c0_i32, %c0_i32_0 : i32, i32
  }
  func.func @transform_2(%arg0: i32) -> (i32, i32) {
    %c0_i32 = arith.constant 0 : i32
    %c0_i32_0 = arith.constant 0 : i32
    %c0_i32_1 = arith.constant 0 : i32
    return %c0_i32, %c0_i32_0 : i32, i32
  }
  func.func @transform_3(%arg0: i32) -> (i32, i32) {
    %c0_i32 = arith.constant 0 : i32
    %c0_i32_0 = arith.constant 0 : i32
    %c0_i32_1 = arith.constant 0 : i32
    return %c0_i32, %c0_i32_0 : i32, i32
  }
  func.func @transform_4(%arg0: i32) -> (i32, i32) {
    %c0_i32 = arith.constant 0 : i32
    %c0_i32_0 = arith.constant 0 : i32
    %c0_i32_1 = arith.constant 0 : i32
    return %c0_i32, %c0_i32_0 : i32, i32
  }
  func.func @transform_5(%arg0: i32) -> (i32, i32) {
    %c0_i32 = arith.constant 0 : i32
    %c0_i32_0 = arith.constant 0 : i32
    return %arg0, %c0_i32 : i32, i32
  }
  func.func @transform_6(%arg0: i32) -> (i32, i32) {
    %c0_i32 = arith.constant 0 : i32
    %c0_i32_0 = arith.constant 0 : i32
    return %arg0, %c0_i32 : i32, i32
  }
}

module attributes {stable_mosaic.version = 11 : i64} {
  func.func @_mlp_kernel_hy(%arg0: i32, %arg1: memref<24x64xf32, #tpu.memory_space<vmem>>, %arg2: memref<64x128xf32, #tpu.memory_space<vmem>>, %arg3: memref<1x128xf32, #tpu.memory_space<vmem>>, %arg4: memref<128x64xf32, #tpu.memory_space<vmem>>, %arg5: memref<1x64xf32, #tpu.memory_space<vmem>>, %arg6: memref<24x128xf32, #tpu.memory_space<vmem>>, %arg7: memref<24x64xf32, #tpu.memory_space<vmem>>) attributes {dimension_semantics = [#tpu.dimension_semantics<parallel>], iteration_bounds = array<i64: 2>, scalar_prefetch = 0 : i64, scratch_operands = 0 : i64, tpu.core_type = #tpu.core_type<tc>, window_params = [{transform_indices = @transform_0, window_bounds = array<i64: 24, 64>}, {pipeline_mode = #tpu.pipeline_mode<synchronous>, transform_indices = @transform_1, window_bounds = array<i64: 64, 128>}, {pipeline_mode = #tpu.pipeline_mode<synchronous>, transform_indices = @transform_2, window_bounds = array<i64: 1, 128>}, {pipeline_mode = #tpu.pipeline_mode<synchronous>, transform_indices = @transform_3, window_bounds = array<i64: 128, 64>}, {pipeline_mode = #tpu.pipeline_mode<synchronous>, transform_indices = @transform_4, window_bounds = array<i64: 1, 64>}, {transform_indices = @transform_5, window_bounds = array<i64: 24, 128>}, {transform_indices = @transform_6, window_bounds = array<i64: 24, 64>}]} {
    %c0 = arith.constant 0 : index
    %c0_0 = arith.constant 0 : index
    %0 = vector.load %arg1[%c0, %c0_0] : memref<24x64xf32, #tpu.memory_space<vmem>>, vector<24x64xf32>
    %c0_1 = arith.constant 0 : index
    %c0_2 = arith.constant 0 : index
    %1 = vector.load %arg2[%c0_1, %c0_2] : memref<64x128xf32, #tpu.memory_space<vmem>>, vector<64x128xf32>
    %cst = arith.constant dense<0.000000e+00> : vector<24x128xf32>
    %2 = tpu.matmul %0, %1, %cst {dimension_numbers = #tpu.dot_dimension_numbers<[1], [0], [0], [1], [0, 0, 1, 1], [], []>} : vector<24x64xf32>, vector<64x128xf32>, vector<24x128xf32> -> vector<24x128xf32>
    %c0_3 = arith.constant 0 : index
    %c0_4 = arith.constant 0 : index
    %3 = vector.load %arg3[%c0_3, %c0_4] : memref<1x128xf32, #tpu.memory_space<vmem>>, vector<1x128xf32>
    %4 = vector.broadcast %3 : vector<1x128xf32> to vector<24x128xf32>
    %5 = arith.addf %2, %4 : vector<24x128xf32>
    %cst_5 = arith.constant 0.000000e+00 : f32
    %6 = vector.broadcast %cst_5 : f32 to vector<24x128xf32>
    %7 = arith.subf %6, %5 : vector<24x128xf32>
    %8 = math.exp %7 : vector<24x128xf32>
    %cst_6 = arith.constant 1.000000e+00 : f32
    %9 = vector.broadcast %cst_6 : f32 to vector<24x128xf32>
    %10 = arith.addf %9, %8 : vector<24x128xf32>
    %cst_7 = arith.constant 1.000000e+00 : f32
    %11 = vector.broadcast %cst_7 : f32 to vector<24x128xf32>
    %12 = arith.divf %11, %10 : vector<24x128xf32>
    %c0_8 = arith.constant 0 : index
    %c0_9 = arith.constant 0 : index
    %13 = vector.load %arg4[%c0_8, %c0_9] : memref<128x64xf32, #tpu.memory_space<vmem>>, vector<128x64xf32>
    %cst_10 = arith.constant dense<0.000000e+00> : vector<24x64xf32>
    %14 = tpu.matmul %12, %13, %cst_10 {dimension_numbers = #tpu.dot_dimension_numbers<[1], [0], [0], [1], [0, 0, 1, 1], [], []>} : vector<24x128xf32>, vector<128x64xf32>, vector<24x64xf32> -> vector<24x64xf32>
    %c0_11 = arith.constant 0 : index
    %c0_12 = arith.constant 0 : index
    %15 = vector.load %arg5[%c0_11, %c0_12] : memref<1x64xf32, #tpu.memory_space<vmem>>, vector<1x64xf32>
    %16 = vector.broadcast %15 : vector<1x64xf32> to vector<24x64xf32>
    %17 = arith.addf %14, %16 : vector<24x64xf32>
    %c0_13 = arith.constant 0 : index
    %c0_14 = arith.constant 0 : index
    %18 = vector.load %arg6[%c0_13, %c0_14] : memref<24x128xf32, #tpu.memory_space<vmem>>, vector<24x128xf32>
    tpu.vector_store %arg6[%c0_13, %c0_14], %12 {strides = array<i32>} : memref<24x128xf32, #tpu.memory_space<vmem>>, vector<24x128xf32>,
    %c0_15 = arith.constant 0 : index
    %c0_16 = arith.constant 0 : index
    %19 = vector.load %arg7[%c0_15, %c0_16] : memref<24x64xf32, #tpu.memory_space<vmem>>, vector<24x64xf32>
    tpu.vector_store %arg7[%c0_15, %c0_16], %17 {strides = array<i32>} : memref<24x64xf32, #tpu.memory_space<vmem>>, vector<24x64xf32>,
    return
  }
  func.func @transform_0(%arg0: i32) -> (i32, i32) {
    %c0_i32 = arith.constant 0 : i32
    %c0_i32_0 = arith.constant 0 : i32
    return %arg0, %c0_i32 : i32, i32
  }
  func.func @transform_1(%arg0: i32) -> (i32, i32) {
    %c0_i32 = arith.constant 0 : i32
    %c0_i32_0 = arith.constant 0 : i32
    %c0_i32_1 = arith.constant 0 : i32
    return %c0_i32, %c0_i32_0 : i32, i32
  }
  func.func @transform_2(%arg0: i32) -> (i32, i32) {
    %c0_i32 = arith.constant 0 : i32
    %c0_i32_0 = arith.constant 0 : i32
    %c0_i32_1 = arith.constant 0 : i32
    return %c0_i32, %c0_i32_0 : i32, i32
  }
  func.func @transform_3(%arg0: i32) -> (i32, i32) {
    %c0_i32 = arith.constant 0 : i32
    %c0_i32_0 = arith.constant 0 : i32
    %c0_i32_1 = arith.constant 0 : i32
    return %c0_i32, %c0_i32_0 : i32, i32
  }
  func.func @transform_4(%arg0: i32) -> (i32, i32) {
    %c0_i32 = arith.constant 0 : i32
    %c0_i32_0 = arith.constant 0 : i32
    %c0_i32_1 = arith.constant 0 : i32
    return %c0_i32, %c0_i32_0 : i32, i32
  }
  func.func @transform_5(%arg0: i32) -> (i32, i32) {
    %c0_i32 = arith.constant 0 : i32
    %c0_i32_0 = arith.constant 0 : i32
    return %arg0, %c0_i32 : i32, i32
  }
  func.func @transform_6(%arg0: i32) -> (i32, i32) {
    %c0_i32 = arith.constant 0 : i32
    %c0_i32_0 = arith.constant 0 : i32
    return %arg0, %c0_i32 : i32, i32
  }
}

</mosaic_0001>

<bundles_post_ra>
// kernel: tpu_custom_call.1
= control target key start
LH: loop header
LB: loop body
LE: loop exit
PB: predicated region body
PF: predicated region fallthrough
CT: control target
= control target key end

     0   :  { %12 = vsyncpa [#allocation3], 0  ;;  %s1312_s0 = inlined_call_operand.vmem [shape: f32[37,64], index: 0, kind: input, shape index: {}]   ;;  %s1313_s1 = inlined_call_operand.vmem [shape: f32[64,128], index: 1, kind: input, shape index: {}]   ;;  %s1314_s2 = inlined_call_operand.vmem [shape: f32[1,128], index: 2, kind: input, shape index: {}]   ;;  %s1315_s3 = inlined_call_operand.vmem [shape: f32[128,64], index: 3, kind: input, shape index: {}]   ;;  %s1316_s4 = inlined_call_operand.vmem [shape: f32[1,64], index: 4, kind: input, shape index: {}]   ;;  %s1317_s5 = inlined_call_operand.hbm [shape: f32[37,128], index: 5, kind: output, shape index: {0}]   ;;  %s1318_s6 = inlined_call_operand.hbm [shape: f32[37,64], index: 6, kind: output, shape index: {1}]  }
   0x1   :  { %14 = vsyncpa [#allocation3 + $0x1], 0 }
   0x2   :  { %15 = vsyncpa [#allocation5], 0 }
   0x3   :  { %17 = vsyncpa [#allocation5 + $0x1], 0  ;;  %s1027_s21 = smov 0   ;;  %s1029_s22 = smov 0  }
   0x4   :  { %s1031_s23 = smov 0   ;;  %s1033_s24 = smov 0  }
   0x5 LB: > { %s1048_s25 = sadd.s32 4294967295, %s981_s24   ;;  %s669_s26 = sadd.s32 4294967294, %s981_s24   ;;  %s981_s24 = sphi %s1033_s24, %s1326_s24   ;;  %s977_s23 = sphi %s1031_s23, %s1325_s23   ;;  %s973_s22 = sphi %s1029_s22, %s1324_s22   ;;  %s969_s21 = sphi %s1027_s21, %s1323_s21  }
   0x6   : > { %s1052_s27 = sadd.s32 1, %s981_s24   ;;  %s140_s28 = sadd.s32 1, %s977_s23 }
   0x7   : > { %s137_s29 = ssub.s32 %s981_s24, %s1052_s27  ;;  %p150_p0 = scmp.ne.s32.totalorder %s977_s23, %s973_s22 }
   0x8   : > { %p138_p1 = scmp.eq.s32.totalorder %s137_s29, 0  ;;  %p151_p2 = scmp.eq.s32.totalorder %s1048_s25, 1 }
   0x9   : > { %p156_p3 = scmp.ne.s32.totalorder %s973_s22, %s969_s21  ;;  %p157_p4 = scmp.eq.s32.totalorder %s669_s26, 1 }
   0xa   : > { %s1063_s30 = scalar_select %p138_p1, %s977_s23, %s140_s28  }
   0xb   : > { %p1065_p5 = por %p151_p2, %p150_p0  ;;  %p1069_p6 = por %p157_p4, %p156_p3 }
   0xc   : > { %p672_p7 = scmp.ge.s32.totalorder %s981_s24, 1  ;;  %p230_p8 = scmp.lt.s32.totalorder %s981_s24, 3 }
   0xe   : > { %p231_p9 = pnand %p672_p7, %p230_p8 }
   0xf   : > { %v296_v0 = vld [vmem:[%s1313_s1] sm:$0xff] (!%p231_p9)  ;;  %v297_v1 = vld [vmem:[%s1313_s1 + $0x8] sm:$0xff] (!%p231_p9)  ;;  %v298_v2 = vld [vmem:[%s1313_s1 + $0x10] sm:$0xff] (!%p231_p9)  ;;  %v983_v3 = vmov (!%p231_p9), 0.0|0.0   ;;  %vm984_vm0 = vmmov (!%p231_p9), 0   ;;  %v985_v6 = vmov (!%p231_p9), 0.0  }
  0x10   : > { %234 = sbr.rel (%p231_p9) target bundleno = 562 (0x232), region = 40  ;;  %789 = vmatprep.subr.bf16.mxu0 (!%p231_p9), %v983_v3  ;;  %v790_v4 = vpack.c.bf16 (!%p231_p9), %v297_v1, %v296_v0  ;;  %v299_v5 = vld [vmem:[%s1313_s1 + $0x18] sm:$0xff] (!%p231_p9)  ;;  %739 = vmatprep.mubr.msk.f32.mxu0 (!%p231_p9), %vm984_vm0, %v985_v6  ;;  %v300_v8 = vld [vmem:[%s1313_s1 + $0x20] sm:$0xff] (!%p231_p9)  ;;  %v301_v9 = vld [vmem:[%s1313_s1 + $0x28] sm:$0xff] (!%p231_p9)  ;;  %vm311_vm1 = vcmask (!%p231_p9), 523264   ;;  %s1182_s29 = sand.u32 (!%p231_p9), 1, %s973_s22  }
  0x11   : > { %s1091_s17 = smul.u32 (!%p231_p9), 3, %s1048_s25  ;;  %801 = vmatprep.subr.bf16.mxu1 (!%p231_p9), %v983_v3  ;;  %780 = vmatprep.mubr.msk.f32.mxu1 (!%p231_p9), %vm984_vm0, %v985_v6  ;;  %v793_v7 = vpack.c.bf16 (!%p231_p9), %v299_v5, %v298_v2  ;;  %v796_v10 = vpack.c.bf16 (!%p231_p9), %v301_v9, %v300_v8  ;;  %v302_v11 = vld [vmem:[%s1313_s1 + $0x30] sm:$0xff] (!%p231_p9)  ;;  %v303_v12 = vld [vmem:[%s1313_s1 + $0x38] sm:$0xff] (!%p231_p9)  ;;  %v419_v17 = vld [vmem:[%s1315_s3] sm:$0xff] (!%p231_p9)  ;;  %s529_s14 = scalar_lea.sflag (!%p231_p9), [#allocation3], %s1182_s29 }
  0x12   : > { %791 = vmatpush3.bf16.msra.mxu0 (!%p231_p9), %v790_v4  ;;  %v799_v13 = vpack.c.bf16 (!%p231_p9), %v303_v12, %v302_v11  ;;  %v420_v18 = vld [vmem:[%s1315_s3 + $0x8] sm:$0xff] (!%p231_p9)  ;;  %v421_v20 = vld [vmem:[%s1315_s3 + $0x10] sm:$0xff] (!%p231_p9)  ;;  %v422_v21 = vld [vmem:[%s1315_s3 + $0x18] sm:$0xff] (!%p231_p9)  ;;  %s825_s9 = smul.u32 (!%p231_p9), 24, %s1182_s29 }
  0x13   : > { %p274_p10 = scmp.lt.s32.totalorder (!%p231_p9), %s1091_s17, 4  ;;  %792 = vmatprep.subr.bf16.mxu0 (!%p231_p9), %v983_v3  ;;  %v802_v19 = vpack.c.bf16 (!%p231_p9), %v420_v18, %v419_v17  ;;  %v805_v22 = vpack.c.bf16 (!%p231_p9), %v422_v21, %v421_v20  ;;  %v423_v23 = vld [vmem:[%s1315_s3 + $0x20] sm:$0xff] (!%p231_p9)  ;;  %v424_v24 = vld [vmem:[%s1315_s3 + $0x28] sm:$0xff] (!%p231_p9)  ;;  %v425_v26 = vld [vmem:[%s1315_s3 + $0x30] sm:$0xff] (!%p231_p9) }
  0x14   : > { %v808_v25 = vpack.c.bf16 (!%p231_p9), %v424_v24, %v423_v23  ;;  %v426_v27 = vld [vmem:[%s1315_s3 + $0x38] sm:$0xff] (!%p231_p9)  ;;  %v427_v29 = vld [vmem:[%s1315_s3 + $0x40] sm:$0xff] (!%p231_p9)  ;;  %v428_v30 = vld [vmem:[%s1315_s3 + $0x48] sm:$0xff] (!%p231_p9)  ;;  %s1185_s10 = scalar_lea.vmem (!%p231_p9), [#allocation2], %s825_s9  ;;  %s1197_s13 = scalar_lea.vmem (!%p231_p9), [#allocation4], %s825_s9 }
  0x15   : > { %803 = vmatpush3.bf16.msra.mxu1 (!%p231_p9), %v802_v19  ;;  %v811_v28 = vpack.c.bf16 (!%p231_p9), %v426_v27, %v425_v26  ;;  %v814_v31 = vpack.c.bf16 (!%p231_p9), %v428_v30, %v427_v29  ;;  %v429_v32 = vld [vmem:[%s1315_s3 + $0x50] sm:$0xff] (!%p231_p9)  ;;  %v430_v33 = vld [vmem:[%s1315_s3 + $0x58] sm:$0xff] (!%p231_p9)  ;;  %v431_v35 = vld [vmem:[%s1315_s3 + $0x60] sm:$0xff] (!%p231_p9) }
  0x16   : > { %794 = vmatpush3.bf16.msra.mxu0 (!%p231_p9), %v793_v7  ;;  %804 = vmatprep.subr.bf16.mxu1 (!%p231_p9), %v983_v3  ;;  %v817_v34 = vpack.c.bf16 (!%p231_p9), %v430_v33, %v429_v32  ;;  %v432_v36 = vld [vmem:[%s1315_s3 + $0x68] sm:$0xff] (!%p231_p9)  ;;  %v433_v38 = vld [vmem:[%s1315_s3 + $0x70] sm:$0xff] (!%p231_p9)  ;;  %v434_v39 = vld [vmem:[%s1315_s3 + $0x78] sm:$0xff] (!%p231_p9) }
  0x17   : > { %s275_s28 = scalar_select %p274_p10, %s1091_s17, 4  ;;  %795 = vmatprep.subr.bf16.mxu0 %v983_v3  ;;  %v820_v37 = vpack.c.bf16 %v432_v36, %v431_v35  ;;  %v823_v40 = vpack.c.bf16 %v434_v39, %v433_v38  ;;  %v674_v41 = vld [vmem:[%s1314_s2] ss:$0 sm:$0xff] }
  0x18   : > { %v678_v2 = vld [vmem:[%s1316_s4] ss:$0 sm:$0xff]  ;;  %s542_s16 = ssub.s32 (%p1065_p5), 5, %s1091_s17 }
  0x19   : > { %s673_s12 = sshll.u32 %s275_s28, 3  ;;  %806 = vmatpush3.bf16.msra.mxu1 %v805_v22  ;;  %p543_p11 = scmp.lt.s32.totalorder (%p1065_p5), %s542_s16, 3 }
  0x1a   : > { %797 = vmatpush3.bf16.msra.mxu0 %v796_v10  ;;  %s277_s15 = scalar_lea.vmem %s1312_s0, %s673_s12  ;;  %807 = vmatprep.subr.bf16.mxu1 %v983_v3 }
  0x1b   : > { %798 = vmatprep.subr.bf16.mxu0 %v983_v3  ;;  %v293_v14 = vld [vmem:[%s277_s15] sm:$0xff]  ;;  %v294_v15 = vld [vmem:[%s277_s15 + $0x8] sm:$0xff]  ;;  %v295_v16 = vld [vmem:[%s277_s15 + $0x10] sm:$0xff] }
  0x1d   : > { %809 = vmatpush3.bf16.msra.mxu1 %v808_v25 }
  0x1e   : > { %800 = vmatpush3.bf16.msra.mxu0 %v799_v13  ;;  %810 = vmatprep.subr.bf16.mxu1 %v983_v3 }
  0x21   : > { %740 = vmatmul.mubr.msk.f32.vlgmr.msra.gmra.mrb[0].mxu0 %vm311_vm1, %v293_v14  ;;  %812 = vmatpush3.bf16.msra.mxu1 %v811_v28 }
  0x22   : > { %742 = vmatprep.mubr.msk.f32.mxu0 %vm984_vm0, %v985_v6  ;;  %813 = vmatprep.subr.bf16.mxu1 %v983_v3 }
  0x25   : > { %743 = vmatmul.mubr.msk.f32.gmra.mrb[2].mxu0 %vm311_vm1, %v294_v15  ;;  %815 = vmatpush3.bf16.msra.mxu1 %v814_v31 }
  0x26   : > { %745 = vmatprep.mubr.msk.f32.mxu0 %vm984_vm0, %v985_v6  ;;  %816 = vmatprep.subr.bf16.mxu1 %v983_v3 }
  0x29   : > { %746 = vmatmul.mubr.msk.f32.gmra.mrb[4].mxu0 %vm311_vm1, %v295_v16  ;;  %818 = vmatpush3.bf16.msra.mxu1 %v817_v34 }
  0x2a   : > { %819 = vmatprep.subr.bf16.mxu1 %v983_v3 }
  0x2d   : > { %821 = vmatpush3.bf16.msra.mxu1 %v820_v37 }
  0x2e   : > { %822 = vmatprep.subr.bf16.mxu1 %v983_v3 }
  0x31   : > { %824 = vmatpush3.bf16.msra.mxu1 %v823_v40 }
  0xf4   : > { %v387_v42 = vpop.f32.mrb[0].mxu0 }
  0xf5   : > { %v388_v43 = vadd.f32 %v674_v41, %v387_v42  ;;  %v741_v44 = vpop.f32.mrb[1].mxu0 }
  0xf7   : > { %v401_v45 = vsub.f32 0.0, %v388_v43 }
  0xf8   : > { %v392_v46 = vpop.f32.mrb[2].mxu0 }
  0xf9   : > { %v404_v47 = vmul.f32 1.442695, %v401_v45  ;;  %v393_v48 = vadd.f32 %v674_v41, %v392_v46  ;;  %v744_v49 = vpop.f32.mrb[3].mxu0 }
  0xfb   : > { %875 = vpow2.f32 %v404_v47  ;;  %v402_v50 = vsub.f32 0.0, %v393_v48 }
  0xfc   : > { %v397_v51 = vpop.f32.mrb[4].mxu0 }
  0xfd   : > { %v406_v52 = vmul.f32 1.442695, %v402_v50  ;;  %v398_v53 = vadd.f32 %v674_v41, %v397_v51  ;;  %v747_v54 = vpop.f32.mrb[5].mxu0 }
  0xff   : > { %877 = vpow2.f32 %v406_v52  ;;  %v403_v55 = vsub.f32 0.0, %v398_v53 }
 0x101   : > { %v408_v56 = vmul.f32 1.442695, %v403_v55 }
 0x103   : > { %879 = vpow2.f32 %v408_v56 }
 0x105   : > { %v876_v57 = vpop.eup %875 }
 0x106   : > { %v410_v58 = vadd.f32 1.0, %v876_v57 }
 0x108   : > { %881 = vrcp.f32 %v410_v58 }
 0x109   : > { %v878_v59 = vpop.eup %877 }
 0x10a   : > { %v411_v60 = vadd.f32 1.0, %v878_v59 }
 0x10c   : > { %883 = vrcp.f32 %v411_v60 }
 0x10d   : > { %v880_v61 = vpop.eup %879 }
 0x10e   : > { %v412_v62 = vadd.f32 1.0, %v880_v61 }
 0x110   : > { %885 = vrcp.f32 %v412_v62 }
 0x112   : > { %v882_v63 = vpop.eup %881 }
 0x113   : > { %781 = vmatmul.mubr.f32.vlgmr.msra.gmra.mrb[0].mxu1 %v882_v63  ;;  %522 = vst [vmem:[%s1185_s10] sm:$0xff] %v882_v63 }
 0x114   : > { %783 = vmatprep.mubr.msk.f32.mxu1 %vm984_vm0, %v985_v6 }
 0x116   : > { %v884_v0 = vpop.eup %883 }
 0x117   : > { %784 = vmatmul.mubr.f32.gmra.mrb[2].mxu1 %v884_v0  ;;  %523 = vst [vmem:[%s1185_s10 + $0x8] sm:$0xff] %v884_v0 }
 0x118   : > { %786 = vmatprep.mubr.msk.f32.mxu1 %vm984_vm0, %v985_v6 }
 0x11a   : > { %v886_v1 = vpop.eup %885 }
 0x11b   : > { %787 = vmatmul.mubr.f32.gmra.mrb[4].mxu1 %v886_v1  ;;  %524 = vst [vmem:[%s1185_s10 + $0x10] sm:$0xff] %v886_v1 }
 0x1e6   : > { %v508_v3 = vpop.f32.mrb[0].mxu1 }
 0x1e7   : > { %v509_v4 = vadd.f32 %v678_v2, %v508_v3  ;;  %v782_v5 = vpop.f32.mrb[1].mxu1 }
 0x1e9   : > { %525 = vst.msk [vmem:[%s1197_s13] sm:$0xff] %vm311_vm1, %v509_v4 }
 0x1ea   : > { %v513_v6 = vpop.f32.mrb[2].mxu1 }
 0x1eb   : > { %v514_v7 = vadd.f32 %v678_v2, %v513_v6  ;;  %v785_v8 = vpop.f32.mrb[3].mxu1  ;;  %540 = sbr.rel (!%p1065_p5) target bundleno = 526 (0x20e), region = 44 }
 0x1ed   : > { %526 = vst.msk [vmem:[%s1197_s13 + $0x8] sm:$0xff] %vm311_vm1, %v514_v7 }
 0x1ee   : > { %v518_v9 = vpop.f32.mrb[4].mxu1 }
 0x1ef   : > { %v519_v10 = vadd.f32 %v678_v2, %v518_v9  ;;  %v788_v11 = vpop.f32.mrb[5].mxu1 }
 0x1f1   : > { %527 = vst.msk [vmem:[%s1197_s13 + $0x10] sm:$0xff] %vm311_vm1, %v519_v10 }
 0x1f2   : > { %s1328_s16 = smov (!%p543_p11, %s542_s16), 3 }
 0x1f3   : > { %s1210_s18 = sshll.u32 %s1328_s16, 7 }
 0x1f4   : > { %s547_s19 = ssub.s32 384, %s1210_s18 }
 0x1f5   : > { %548 = vsyncadd %s529_s14, %s547_s19  ;;  %p680_p12 = scmp.ne.s32.totalorder %s1210_s18, 0  ;;  %s691_s20 = smul.u32 384, %s1048_s25 }
 0x1f6   : > { %s553_s26 = sshll.u32 %s1185_s10, 4  ;;  %s986_s16 = smov [#allocation2]   ;;  %s1223_s26 = int_to_ptr.vmem [resolvable:$true] %s553_s26 }
 0x1f7   : > { %s1221_s11 = scalar_lea.hbm %s1317_s5, %s691_s20  ;;  %s887_s12 = scalar_lea.vmem %s1223_s26, %s1210_s18 }
 0x1f8   : > { %p888_p13 = scmp.ne.s32.totalorder %s1223_s26, %s887_s12  ;;  %s891_s19 = sshll.u32 %s986_s16, 4  ;;  %s892_s19 = int_to_ptr.vmem [resolvable:$false] %s891_s19 }
 0x1f9   : > { %s893_s15 = scalar_lea.vmem %s892_s19, 768  ;;  %p894_p2 = scmp.lt.s32.totalorder %s1223_s26, %s892_s19 }
 0x1fa   : > { %p889_p0 = pnand %p888_p13, %p680_p12  ;;  %p895_p3 = scmp.lt.s32.totalorder %s893_s15, %s887_s12 }
 0x1fc   : > { %p890_p1 = pneg %p889_p0  ;;  %p896_p4 = por %p895_p3, %p894_p2 }
 0x1fe   : > { %p897_p7 = pnand %p896_p4, %p890_p1 }
 0x200   : > { %900 = shalt.err (!%p897_p7)
}
 0x201   : > { %s901_s10 = scalar_lea.hbm %s1221_s11, %s1210_s18  ;;  %s905_s9 = scalar_lea.hbm %s1317_s5, 640 }
 0x202   : > { %p902_p8 = scmp.ne.s32.totalorder %s1221_s11, %s901_s10  ;;  %p906_p11 = scmp.lt.u32.totalorder %s1221_s11, %s1317_s5 }
 0x203   : > { %p907_p13 = scmp.lt.u32.totalorder %s905_s9, %s901_s10  ;;  %p909_p1 = scmp.lt.u32.totalorder %s901_s10, %s1221_s11 }
 0x204   : > { %p903_p9 = pnand %p902_p8, %p680_p12 }
 0x205   : > { %p908_p0 = por %p907_p13, %p906_p11 }
 0x206   : > { %p904_p10 = pneg %p903_p9 }
 0x207   : > { %p910_p2 = por %p909_p1, %p908_p0 }
 0x209   : > { %p911_p3 = pnand %p910_p2, %p904_p10 }
 0x20b   : > { %914 = shalt.err (!%p911_p3)
}
 0x20c   : > { %s987_s12 = smov 128   ;;  %s988_s19 = smov 8  }
 0x20d   : > { %559 = dma.vmem_to_hbm [thread:$0]  (%p680_p12), %s1223_s26, %s1210_s18, %s1221_s11, %s529_s14, %s987_s12, %s987_s12, %s988_s19  }
 0x20e PF: > { %562 = sbr.rel (!%p1065_p5) target bundleno = 562 (0x232), region = 48  ;;  %s564_s10 = ssub.s32 (%p1065_p5), 5, %s1091_s17 }
 0x20f   : > { %p565_p4 = scmp.lt.s32.totalorder (%p1065_p5), %s564_s10, 3  ;;  %s1321_s9 = scalar_lea.sflag (%p1065_p5), [#allocation5], %s1182_s29 }
 0x215   : > { %s1330_s10 = smov (!%p565_p4, %s564_s10), 3 }
 0x216   : > { %s1254_s20 = sshll.u32 %s1330_s10, 7 }
 0x217   : > { %s569_s28 = ssub.s32 384, %s1254_s20 }
 0x218   : > { %570 = vsyncadd %s1321_s9, %s569_s28  ;;  %p685_p12 = scmp.ne.s32.totalorder %s1254_s20, 0  ;;  %s692_s14 = smul.u32 384, %s1048_s25 }
 0x219   : > { %s575_s7 = sshll.u32 %s1197_s13, 4  ;;  %s989_s16 = smov [#allocation4]   ;;  %s1267_s7 = int_to_ptr.vmem [resolvable:$true] %s575_s7 }
 0x21a   : > { %s1265_s17 = scalar_lea.hbm %s1318_s6, %s692_s14  ;;  %s915_s11 = scalar_lea.vmem %s1267_s7, %s1254_s20 }
 0x21b   : > { %p916_p5 = scmp.ne.s32.totalorder %s1267_s7, %s915_s11  ;;  %s919_s15 = sshll.u32 %s989_s16, 4  ;;  %s920_s15 = int_to_ptr.vmem [resolvable:$false] %s919_s15 }
 0x21c   : > { %s921_s25 = scalar_lea.vmem %s920_s15, 768  ;;  %p922_p9 = scmp.lt.s32.totalorder %s1267_s7, %s920_s15 }
 0x21d   : > { %p917_p7 = pnand %p916_p5, %p685_p12  ;;  %p923_p10 = scmp.lt.s32.totalorder %s921_s25, %s915_s11 }
 0x21f   : > { %p918_p8 = pneg %p917_p7  ;;  %p924_p11 = por %p923_p10, %p922_p9 }
 0x221   : > { %p925_p13 = pnand %p924_p11, %p918_p8 }
 0x223   : > { %928 = shalt.err (!%p925_p13)
}
 0x224   : > { %s929_s13 = scalar_lea.hbm %s1265_s17, %s1254_s20  ;;  %s933_s10 = scalar_lea.hbm %s1318_s6, 640 }
 0x225   : > { %p930_p0 = scmp.ne.s32.totalorder %s1265_s17, %s929_s13  ;;  %p934_p3 = scmp.lt.u32.totalorder %s1265_s17, %s1318_s6 }
 0x226   : > { %p935_p4 = scmp.lt.u32.totalorder %s933_s10, %s929_s13  ;;  %p937_p7 = scmp.lt.u32.totalorder %s929_s13, %s1265_s17 }
 0x227   : > { %p931_p1 = pnand %p930_p0, %p685_p12 }
 0x228   : > { %p936_p5 = por %p935_p4, %p934_p3 }
 0x229   : > { %p932_p2 = pneg %p931_p1 }
 0x22a   : > { %p938_p8 = por %p937_p7, %p936_p5 }
 0x22c   : > { %p939_p9 = pnand %p938_p8, %p932_p2 }
 0x22e   : > { %942 = shalt.err (!%p939_p9)
}
 0x22f   : > { %s990_s14 = smov 128   ;;  %s991_s18 = smov 8  }
 0x230   : > { %s1322_s26 = scalar_lea.sflag [#allocation5], %s1182_s29 }
 0x231   : > { %581 = dma.vmem_to_hbm [thread:$0]  (%p685_p12), %s1267_s7, %s1254_s20, %s1265_s17, %s1322_s26, %s990_s14, %s990_s14, %s991_s18  }
 0x232 PF: > { %p835_p10 = scmp.ge.s32.totalorder %s981_s24, 2  ;;  %s590_s11 = sand.u32 1, %s969_s21  }
 0x233   : > { %s591_s16 = scalar_lea.sflag [#allocation3], %s590_s11 }
 0x234   : > { %p829_p11 = pnand %p835_p10, %p1069_p6 }
 0x236   : > { %960 = dma.done.wait (!%p829_p11), %s591_s16, 384  }
 0x237   : > { %962 = vsyncadd (!%p829_p11), %s591_s16, 4294966912  ;;  %s600_s15 = scalar_lea.sflag [#allocation5], %s590_s11 }
 0x238   : > { %964 = dma.done.wait (!%p829_p11), %s600_s15, 384  }
 0x239   : > { %966 = vsyncadd (!%p829_p11), %s600_s15, 4294966912  ;;  %p20_p12 = scmp.ge.s32.totalorder %s1052_s27, 4   ;;  %s1323_s21 = smov %s973_s22 }
 0x23a   : > { %s1324_s22 = smov %s977_s23  ;;  %s1325_s23 = smov %s1063_s30 }
 0x23b   : > { %s1326_s24 = smov %s1052_s27  ;;  %22 = sbr.rel (!%p20_p12) target bundleno = 5 (0x5), region = 92 }
 0x242   :  { %605 = vsyncpa [#allocation3], 1 }
 0x243   :  { %607 = vsyncpa [#allocation3 + $0x1], 1 }
 0x244   :  { %608 = vsyncpa [#allocation5], 1 }
 0x245   :  { %610 = vsyncpa [#allocation5 + $0x1], 1 }

// kernel: tpu_custom_call.1
= control target key start
LH: loop header
LB: loop body
LE: loop exit
PB: predicated region body
PF: predicated region fallthrough
CT: control target
= control target key end

     0   :  { %12 = vsyncpa [#allocation3], 0  ;;  %s1312_s0 = inlined_call_operand.vmem [shape: f32[37,64], index: 0, kind: input, shape index: {}]   ;;  %s1313_s1 = inlined_call_operand.vmem [shape: f32[64,128], index: 1, kind: input, shape index: {}]   ;;  %s1314_s2 = inlined_call_operand.vmem [shape: f32[1,128], index: 2, kind: input, shape index: {}]   ;;  %s1315_s3 = inlined_call_operand.vmem [shape: f32[128,64], index: 3, kind: input, shape index: {}]   ;;  %s1316_s4 = inlined_call_operand.vmem [shape: f32[1,64], index: 4, kind: input, shape index: {}]   ;;  %s1317_s5 = inlined_call_operand.hbm [shape: f32[37,128], index: 5, kind: output, shape index: {0}]   ;;  %s1318_s6 = inlined_call_operand.hbm [shape: f32[37,64], index: 6, kind: output, shape index: {1}]  }
   0x1   :  { %14 = vsyncpa [#allocation3 + $0x1], 0 }
   0x2   :  { %15 = vsyncpa [#allocation5], 0 }
   0x3   :  { %17 = vsyncpa [#allocation5 + $0x1], 0  ;;  %s1027_s21 = smov 0   ;;  %s1029_s22 = smov 0  }
   0x4   :  { %s1031_s23 = smov 0   ;;  %s1033_s24 = smov 0  }
   0x5 LB: > { %s1048_s25 = sadd.s32 4294967295, %s981_s24   ;;  %s669_s26 = sadd.s32 4294967294, %s981_s24   ;;  %s981_s24 = sphi %s1033_s24, %s1326_s24   ;;  %s977_s23 = sphi %s1031_s23, %s1325_s23   ;;  %s973_s22 = sphi %s1029_s22, %s1324_s22   ;;  %s969_s21 = sphi %s1027_s21, %s1323_s21  }
   0x6   : > { %s1052_s27 = sadd.s32 1, %s981_s24   ;;  %s140_s28 = sadd.s32 1, %s977_s23 }
   0x7   : > { %s137_s29 = ssub.s32 %s981_s24, %s1052_s27  ;;  %p150_p0 = scmp.ne.s32.totalorder %s977_s23, %s973_s22 }
   0x8   : > { %p138_p1 = scmp.eq.s32.totalorder %s137_s29, 0  ;;  %p151_p2 = scmp.eq.s32.totalorder %s1048_s25, 1 }
   0x9   : > { %p156_p3 = scmp.ne.s32.totalorder %s973_s22, %s969_s21  ;;  %p157_p4 = scmp.eq.s32.totalorder %s669_s26, 1 }
   0xa   : > { %s1063_s30 = scalar_select %p138_p1, %s977_s23, %s140_s28  }
   0xb   : > { %p1065_p5 = por %p151_p2, %p150_p0  ;;  %p1069_p6 = por %p157_p4, %p156_p3 }
   0xc   : > { %p672_p7 = scmp.ge.s32.totalorder %s981_s24, 1  ;;  %p230_p8 = scmp.lt.s32.totalorder %s981_s24, 3 }
   0xe   : > { %p231_p9 = pnand %p672_p7, %p230_p8 }
   0xf   : > { %v296_v0 = vld [vmem:[%s1313_s1] sm:$0xff] (!%p231_p9)  ;;  %v297_v1 = vld [vmem:[%s1313_s1 + $0x8] sm:$0xff] (!%p231_p9)  ;;  %v298_v2 = vld [vmem:[%s1313_s1 + $0x10] sm:$0xff] (!%p231_p9)  ;;  %v983_v3 = vmov (!%p231_p9), 0.0|0.0   ;;  %vm984_vm0 = vmmov (!%p231_p9), 0   ;;  %v985_v6 = vmov (!%p231_p9), 0.0  }
  0x10   : > { %234 = sbr.rel (%p231_p9) target bundleno = 562 (0x232), region = 40  ;;  %789 = vmatprep.subr.bf16.mxu0 (!%p231_p9), %v983_v3  ;;  %v790_v4 = vpack.c.bf16 (!%p231_p9), %v297_v1, %v296_v0  ;;  %v299_v5 = vld [vmem:[%s1313_s1 + $0x18] sm:$0xff] (!%p231_p9)  ;;  %739 = vmatprep.mubr.msk.f32.mxu0 (!%p231_p9), %vm984_vm0, %v985_v6  ;;  %v300_v8 = vld [vmem:[%s1313_s1 + $0x20] sm:$0xff] (!%p231_p9)  ;;  %v301_v9 = vld [vmem:[%s1313_s1 + $0x28] sm:$0xff] (!%p231_p9)  ;;  %vm311_vm1 = vcmask (!%p231_p9), 523264   ;;  %s1182_s29 = sand.u32 (!%p231_p9), 1, %s973_s22  }
  0x11   : > { %s1091_s17 = smul.u32 (!%p231_p9), 3, %s1048_s25  ;;  %801 = vmatprep.subr.bf16.mxu1 (!%p231_p9), %v983_v3  ;;  %780 = vmatprep.mubr.msk.f32.mxu1 (!%p231_p9), %vm984_vm0, %v985_v6  ;;  %v793_v7 = vpack.c.bf16 (!%p231_p9), %v299_v5, %v298_v2  ;;  %v796_v10 = vpack.c.bf16 (!%p231_p9), %v301_v9, %v300_v8  ;;  %v302_v11 = vld [vmem:[%s1313_s1 + $0x30] sm:$0xff] (!%p231_p9)  ;;  %v303_v12 = vld [vmem:[%s1313_s1 + $0x38] sm:$0xff] (!%p231_p9)  ;;  %v419_v17 = vld [vmem:[%s1315_s3] sm:$0xff] (!%p231_p9)  ;;  %s529_s14 = scalar_lea.sflag (!%p231_p9), [#allocation3], %s1182_s29 }
  0x12   : > { %791 = vmatpush3.bf16.msra.mxu0 (!%p231_p9), %v790_v4  ;;  %v799_v13 = vpack.c.bf16 (!%p231_p9), %v303_v12, %v302_v11  ;;  %v420_v18 = vld [vmem:[%s1315_s3 + $0x8] sm:$0xff] (!%p231_p9)  ;;  %v421_v20 = vld [vmem:[%s1315_s3 + $0x10] sm:$0xff] (!%p231_p9)  ;;  %v422_v21 = vld [vmem:[%s1315_s3 + $0x18] sm:$0xff] (!%p231_p9)  ;;  %s825_s9 = smul.u32 (!%p231_p9), 24, %s1182_s29 }
  0x13   : > { %p274_p10 = scmp.lt.s32.totalorder (!%p231_p9), %s1091_s17, 4  ;;  %792 = vmatprep.subr.bf16.mxu0 (!%p231_p9), %v983_v3  ;;  %v802_v19 = vpack.c.bf16 (!%p231_p9), %v420_v18, %v419_v17  ;;  %v805_v22 = vpack.c.bf16 (!%p231_p9), %v422_v21, %v421_v20  ;;  %v423_v23 = vld [vmem:[%s1315_s3 + $0x20] sm:$0xff] (!%p231_p9)  ;;  %v424_v24 = vld [vmem:[%s1315_s3 + $0x28] sm:$0xff] (!%p231_p9)  ;;  %v425_v26 = vld [vmem:[%s1315_s3 + $0x30] sm:$0xff] (!%p231_p9) }
  0x14   : > { %v808_v25 = vpack.c.bf16 (!%p231_p9), %v424_v24, %v423_v23  ;;  %v426_v27 = vld [vmem:[%s1315_s3 + $0x38] sm:$0xff] (!%p231_p9)  ;;  %v427_v29 = vld [vmem:[%s1315_s3 + $0x40] sm:$0xff] (!%p231_p9)  ;;  %v428_v30 = vld [vmem:[%s1315_s3 + $0x48] sm:$0xff] (!%p231_p9)  ;;  %s1185_s10 = scalar_lea.vmem (!%p231_p9), [#allocation2], %s825_s9  ;;  %s1197_s13 = scalar_lea.vmem (!%p231_p9), [#allocation4], %s825_s9 }
  0x15   : > { %803 = vmatpush3.bf16.msra.mxu1 (!%p231_p9), %v802_v19  ;;  %v811_v28 = vpack.c.bf16 (!%p231_p9), %v426_v27, %v425_v26  ;;  %v814_v31 = vpack.c.bf16 (!%p231_p9), %v428_v30, %v427_v29  ;;  %v429_v32 = vld [vmem:[%s1315_s3 + $0x50] sm:$0xff] (!%p231_p9)  ;;  %v430_v33 = vld [vmem:[%s1315_s3 + $0x58] sm:$0xff] (!%p231_p9)  ;;  %v431_v35 = vld [vmem:[%s1315_s3 + $0x60] sm:$0xff] (!%p231_p9) }
  0x16   : > { %794 = vmatpush3.bf16.msra.mxu0 (!%p231_p9), %v793_v7  ;;  %804 = vmatprep.subr.bf16.mxu1 (!%p231_p9), %v983_v3  ;;  %v817_v34 = vpack.c.bf16 (!%p231_p9), %v430_v33, %v429_v32  ;;  %v432_v36 = vld [vmem:[%s1315_s3 + $0x68] sm:$0xff] (!%p231_p9)  ;;  %v433_v38 = vld [vmem:[%s1315_s3 + $0x70] sm:$0xff] (!%p231_p9)  ;;  %v434_v39 = vld [vmem:[%s1315_s3 + $0x78] sm:$0xff] (!%p231_p9) }
  0x17   : > { %s275_s28 = scalar_select %p274_p10, %s1091_s17, 4  ;;  %795 = vmatprep.subr.bf16.mxu0 %v983_v3  ;;  %v820_v37 = vpack.c.bf16 %v432_v36, %v431_v35  ;;  %v823_v40 = vpack.c.bf16 %v434_v39, %v433_v38  ;;  %v674_v41 = vld [vmem:[%s1314_s2] ss:$0 sm:$0xff] }
  0x18   : > { %v678_v2 = vld [vmem:[%s1316_s4] ss:$0 sm:$0xff]  ;;  %s542_s16 = ssub.s32 (%p1065_p5), 5, %s1091_s17 }
  0x19   : > { %s673_s12 = sshll.u32 %s275_s28, 3  ;;  %806 = vmatpush3.bf16.msra.mxu1 %v805_v22  ;;  %p543_p11 = scmp.lt.s32.totalorder (%p1065_p5), %s542_s16, 3 }
  0x1a   : > { %797 = vmatpush3.bf16.msra.mxu0 %v796_v10  ;;  %s277_s15 = scalar_lea.vmem %s1312_s0, %s673_s12  ;;  %807 = vmatprep.subr.bf16.mxu1 %v983_v3 }
  0x1b   : > { %798 = vmatprep.subr.bf16.mxu0 %v983_v3  ;;  %v293_v14 = vld [vmem:[%s277_s15] sm:$0xff]  ;;  %v294_v15 = vld [vmem:[%s277_s15 + $0x8] sm:$0xff]  ;;  %v295_v16 = vld [vmem:[%s277_s15 + $0x10] sm:$0xff] }
  0x1d   : > { %809 = vmatpush3.bf16.msra.mxu1 %v808_v25 }
  0x1e   : > { %800 = vmatpush3.bf16.msra.mxu0 %v799_v13  ;;  %810 = vmatprep.subr.bf16.mxu1 %v983_v3 }
  0x21   : > { %740 = vmatmul.mubr.msk.f32.vlgmr.msra.gmra.mrb[0].mxu0 %vm311_vm1, %v293_v14  ;;  %812 = vmatpush3.bf16.msra.mxu1 %v811_v28 }
  0x22   : > { %742 = vmatprep.mubr.msk.f32.mxu0 %vm984_vm0, %v985_v6  ;;  %813 = vmatprep.subr.bf16.mxu1 %v983_v3 }
  0x25   : > { %743 = vmatmul.mubr.msk.f32.gmra.mrb[2].mxu0 %vm311_vm1, %v294_v15  ;;  %815 = vmatpush3.bf16.msra.mxu1 %v814_v31 }
  0x26   : > { %745 = vmatprep.mubr.msk.f32.mxu0 %vm984_vm0, %v985_v6  ;;  %816 = vmatprep.subr.bf16.mxu1 %v983_v3 }
  0x29   : > { %746 = vmatmul.mubr.msk.f32.gmra.mrb[4].mxu0 %vm311_vm1, %v295_v16  ;;  %818 = vmatpush3.bf16.msra.mxu1 %v817_v34 }
  0x2a   : > { %819 = vmatprep.subr.bf16.mxu1 %v983_v3 }
  0x2d   : > { %821 = vmatpush3.bf16.msra.mxu1 %v820_v37 }
  0x2e   : > { %822 = vmatprep.subr.bf16.mxu1 %v983_v3 }
  0x31   : > { %824 = vmatpush3.bf16.msra.mxu1 %v823_v40 }
  0xf4   : > { %v387_v42 = vpop.f32.mrb[0].mxu0 }
  0xf5   : > { %v388_v43 = vadd.f32 %v674_v41, %v387_v42  ;;  %v741_v44 = vpop.f32.mrb[1].mxu0 }
  0xf7   : > { %v401_v45 = vsub.f32 0.0, %v388_v43 }
  0xf8   : > { %v392_v46 = vpop.f32.mrb[2].mxu0 }
  0xf9   : > { %v404_v47 = vmul.f32 1.442695, %v401_v45  ;;  %v393_v48 = vadd.f32 %v674_v41, %v392_v46  ;;  %v744_v49 = vpop.f32.mrb[3].mxu0 }
  0xfb   : > { %875 = vpow2.f32 %v404_v47  ;;  %v402_v50 = vsub.f32 0.0, %v393_v48 }
  0xfc   : > { %v397_v51 = vpop.f32.mrb[4].mxu0 }
  0xfd   : > { %v406_v52 = vmul.f32 1.442695, %v402_v50  ;;  %v398_v53 = vadd.f32 %v674_v41, %v397_v51  ;;  %v747_v54 = vpop.f32.mrb[5].mxu0 }
  0xff   : > { %877 = vpow2.f32 %v406_v52  ;;  %v403_v55 = vsub.f32 0.0, %v398_v53 }
 0x101   : > { %v408_v56 = vmul.f32 1.442695, %v403_v55 }
 0x103   : > { %879 = vpow2.f32 %v408_v56 }
 0x105   : > { %v876_v57 = vpop.eup %875 }
 0x106   : > { %v410_v58 = vadd.f32 1.0, %v876_v57 }
 0x108   : > { %881 = vrcp.f32 %v410_v58 }
 0x109   : > { %v878_v59 = vpop.eup %877 }
 0x10a   : > { %v411_v60 = vadd.f32 1.0, %v878_v59 }
 0x10c   : > { %883 = vrcp.f32 %v411_v60 }
 0x10d   : > { %v880_v61 = vpop.eup %879 }
 0x10e   : > { %v412_v62 = vadd.f32 1.0, %v880_v61 }
 0x110   : > { %885 = vrcp.f32 %v412_v62 }
 0x112   : > { %v882_v63 = vpop.eup %881 }
 0x113   : > { %781 = vmatmul.mubr.f32.vlgmr.msra.gmra.mrb[0].mxu1 %v882_v63  ;;  %522 = vst [vmem:[%s1185_s10] sm:$0xff] %v882_v63 }
 0x114   : > { %783 = vmatprep.mubr.msk.f32.mxu1 %vm984_vm0, %v985_v6 }
 0x116   : > { %v884_v0 = vpop.eup %883 }
 0x117   : > { %784 = vmatmul.mubr.f32.gmra.mrb[2].mxu1 %v884_v0  ;;  %523 = vst [vmem:[%s1185_s10 + $0x8] sm:$0xff] %v884_v0 }
 0x118   : > { %786 = vmatprep.mubr.msk.f32.mxu1 %vm984_vm0, %v985_v6 }
 0x11a   : > { %v886_v1 = vpop.eup %885 }
 0x11b   : > { %787 = vmatmul.mubr.f32.gmra.mrb[4].mxu1 %v886_v1  ;;  %524 = vst [vmem:[%s1185_s10 + $0x10] sm:$0xff] %v886_v1 }
 0x1e6   : > { %v508_v3 = vpop.f32.mrb[0].mxu1 }
 0x1e7   : > { %v509_v4 = vadd.f32 %v678_v2, %v508_v3  ;;  %v782_v5 = vpop.f32.mrb[1].mxu1 }
 0x1e9   : > { %525 = vst.msk [vmem:[%s1197_s13] sm:$0xff] %vm311_vm1, %v509_v4 }
 0x1ea   : > { %v513_v6 = vpop.f32.mrb[2].mxu1 }
 0x1eb   : > { %v514_v7 = vadd.f32 %v678_v2, %v513_v6  ;;  %v785_v8 = vpop.f32.mrb[3].mxu1  ;;  %540 = sbr.rel (!%p1065_p5) target bundleno = 526 (0x20e), region = 44 }
 0x1ed   : > { %526 = vst.msk [vmem:[%s1197_s13 + $0x8] sm:$0xff] %vm311_vm1, %v514_v7 }
 0x1ee   : > { %v518_v9 = vpop.f32.mrb[4].mxu1 }
 0x1ef   : > { %v519_v10 = vadd.f32 %v678_v2, %v518_v9  ;;  %v788_v11 = vpop.f32.mrb[5].mxu1 }
 0x1f1   : > { %527 = vst.msk [vmem:[%s1197_s13 + $0x10] sm:$0xff] %vm311_vm1, %v519_v10 }
 0x1f2   : > { %s1328_s16 = smov (!%p543_p11, %s542_s16), 3 }
 0x1f3   : > { %s1210_s18 = sshll.u32 %s1328_s16, 7 }
 0x1f4   : > { %s547_s19 = ssub.s32 384, %s1210_s18 }
 0x1f5   : > { %548 = vsyncadd %s529_s14, %s547_s19  ;;  %p680_p12 = scmp.ne.s32.totalorder %s1210_s18, 0  ;;  %s691_s20 = smul.u32 384, %s1048_s25 }
 0x1f6   : > { %s553_s26 = sshll.u32 %s1185_s10, 4  ;;  %s986_s16 = smov [#allocation2]   ;;  %s1223_s26 = int_to_ptr.vmem [resolvable:$true] %s553_s26 }
 0x1f7   : > { %s1221_s11 = scalar_lea.hbm %s1317_s5, %s691_s20  ;;  %s887_s12 = scalar_lea.vmem %s1223_s26, %s1210_s18 }
 0x1f8   : > { %p888_p13 = scmp.ne.s32.totalorder %s1223_s26, %s887_s12  ;;  %s891_s19 = sshll.u32 %s986_s16, 4  ;;  %s892_s19 = int_to_ptr.vmem [resolvable:$false] %s891_s19 }
 0x1f9   : > { %s893_s15 = scalar_lea.vmem %s892_s19, 768  ;;  %p894_p2 = scmp.lt.s32.totalorder %s1223_s26, %s892_s19 }
 0x1fa   : > { %p889_p0 = pnand %p888_p13, %p680_p12  ;;  %p895_p3 = scmp.lt.s32.totalorder %s893_s15, %s887_s12 }
 0x1fc   : > { %p890_p1 = pneg %p889_p0  ;;  %p896_p4 = por %p895_p3, %p894_p2 }
 0x1fe   : > { %p897_p7 = pnand %p896_p4, %p890_p1 }
 0x200   : > { %900 = shalt.err (!%p897_p7)
}
 0x201   : > { %s901_s10 = scalar_lea.hbm %s1221_s11, %s1210_s18  ;;  %s905_s9 = scalar_lea.hbm %s1317_s5, 640 }
 0x202   : > { %p902_p8 = scmp.ne.s32.totalorder %s1221_s11, %s901_s10  ;;  %p906_p11 = scmp.lt.u32.totalorder %s1221_s11, %s1317_s5 }
 0x203   : > { %p907_p13 = scmp.lt.u32.totalorder %s905_s9, %s901_s10  ;;  %p909_p1 = scmp.lt.u32.totalorder %s901_s10, %s1221_s11 }
 0x204   : > { %p903_p9 = pnand %p902_p8, %p680_p12 }
 0x205   : > { %p908_p0 = por %p907_p13, %p906_p11 }
 0x206   : > { %p904_p10 = pneg %p903_p9 }
 0x207   : > { %p910_p2 = por %p909_p1, %p908_p0 }
 0x209   : > { %p911_p3 = pnand %p910_p2, %p904_p10 }
 0x20b   : > { %914 = shalt.err (!%p911_p3)
}
 0x20c   : > { %s987_s12 = smov 128   ;;  %s988_s19 = smov 8  }
 0x20d   : > { %559 = dma.vmem_to_hbm [thread:$0]  (%p680_p12), %s1223_s26, %s1210_s18, %s1221_s11, %s529_s14, %s987_s12, %s987_s12, %s988_s19  }
 0x20e PF: > { %562 = sbr.rel (!%p1065_p5) target bundleno = 562 (0x232), region = 48  ;;  %s564_s10 = ssub.s32 (%p1065_p5), 5, %s1091_s17 }
 0x20f   : > { %p565_p4 = scmp.lt.s32.totalorder (%p1065_p5), %s564_s10, 3  ;;  %s1321_s9 = scalar_lea.sflag (%p1065_p5), [#allocation5], %s1182_s29 }
 0x215   : > { %s1330_s10 = smov (!%p565_p4, %s564_s10), 3 }
 0x216   : > { %s1254_s20 = sshll.u32 %s1330_s10, 7 }
 0x217   : > { %s569_s28 = ssub.s32 384, %s1254_s20 }
 0x218   : > { %570 = vsyncadd %s1321_s9, %s569_s28  ;;  %p685_p12 = scmp.ne.s32.totalorder %s1254_s20, 0  ;;  %s692_s14 = smul.u32 384, %s1048_s25 }
 0x219   : > { %s575_s7 = sshll.u32 %s1197_s13, 4  ;;  %s989_s16 = smov [#allocation4]   ;;  %s1267_s7 = int_to_ptr.vmem [resolvable:$true] %s575_s7 }
 0x21a   : > { %s1265_s17 = scalar_lea.hbm %s1318_s6, %s692_s14  ;;  %s915_s11 = scalar_lea.vmem %s1267_s7, %s1254_s20 }
 0x21b   : > { %p916_p5 = scmp.ne.s32.totalorder %s1267_s7, %s915_s11  ;;  %s919_s15 = sshll.u32 %s989_s16, 4  ;;  %s920_s15 = int_to_ptr.vmem [resolvable:$false] %s919_s15 }
 0x21c   : > { %s921_s25 = scalar_lea.vmem %s920_s15, 768  ;;  %p922_p9 = scmp.lt.s32.totalorder %s1267_s7, %s920_s15 }
 0x21d   : > { %p917_p7 = pnand %p916_p5, %p685_p12  ;;  %p923_p10 = scmp.lt.s32.totalorder %s921_s25, %s915_s11 }
 0x21f   : > { %p918_p8 = pneg %p917_p7  ;;  %p924_p11 = por %p923_p10, %p922_p9 }
 0x221   : > { %p925_p13 = pnand %p924_p11, %p918_p8 }
 0x223   : > { %928 = shalt.err (!%p925_p13)
}
 0x224   : > { %s929_s13 = scalar_lea.hbm %s1265_s17, %s1254_s20  ;;  %s933_s10 = scalar_lea.hbm %s1318_s6, 640 }
 0x225   : > { %p930_p0 = scmp.ne.s32.totalorder %s1265_s17, %s929_s13  ;;  %p934_p3 = scmp.lt.u32.totalorder %s1265_s17, %s1318_s6 }
 0x226   : > { %p935_p4 = scmp.lt.u32.totalorder %s933_s10, %s929_s13  ;;  %p937_p7 = scmp.lt.u32.totalorder %s929_s13, %s1265_s17 }
 0x227   : > { %p931_p1 = pnand %p930_p0, %p685_p12 }
 0x228   : > { %p936_p5 = por %p935_p4, %p934_p3 }
 0x229   : > { %p932_p2 = pneg %p931_p1 }
 0x22a   : > { %p938_p8 = por %p937_p7, %p936_p5 }
 0x22c   : > { %p939_p9 = pnand %p938_p8, %p932_p2 }
 0x22e   : > { %942 = shalt.err (!%p939_p9)
}
 0x22f   : > { %s990_s14 = smov 128   ;;  %s991_s18 = smov 8  }
 0x230   : > { %s1322_s26 = scalar_lea.sflag [#allocation5], %s1182_s29 }
 0x231   : > { %581 = dma.vmem_to_hbm [thread:$0]  (%p685_p12), %s1267_s7, %s1254_s20, %s1265_s17, %s1322_s26, %s990_s14, %s990_s14, %s991_s18  }
 0x232 PF: > { %p835_p10 = scmp.ge.s32.totalorder %s981_s24, 2  ;;  %s590_s11 = sand.u32 1, %s969_s21  }
 0x233   : > { %s591_s16 = scalar_lea.sflag [#allocation3], %s590_s11 }
 0x234   : > { %p829_p11 = pnand %p835_p10, %p1069_p6 }
 0x236   : > { %960 = dma.done.wait (!%p829_p11), %s591_s16, 384  }
 0x237   : > { %962 = vsyncadd (!%p829_p11), %s591_s16, 4294966912  ;;  %s600_s15 = scalar_lea.sflag [#allocation5], %s590_s11 }
 0x238   : > { %964 = dma.done.wait (!%p829_p11), %s600_s15, 384  }
 0x239   : > { %966 = vsyncadd (!%p829_p11), %s600_s15, 4294966912  ;;  %p20_p12 = scmp.ge.s32.totalorder %s1052_s27, 4   ;;  %s1323_s21 = smov %s973_s22 }
 0x23a   : > { %s1324_s22 = smov %s977_s23  ;;  %s1325_s23 = smov %s1063_s30 }
 0x23b   : > { %s1326_s24 = smov %s1052_s27  ;;  %22 = sbr.rel (!%p20_p12) target bundleno = 5 (0x5), region = 92 }
 0x242   :  { %605 = vsyncpa [#allocation3], 1 }
 0x243   :  { %607 = vsyncpa [#allocation3 + $0x1], 1 }
 0x244   :  { %608 = vsyncpa [#allocation5], 1 }
 0x245   :  { %610 = vsyncpa [#allocation5 + $0x1], 1 }

</bundles_post_ra>
